<compile_context>
chip_gen: v5e
topology: v5e:2x2
jax: 0.10.0
libtpu: 0.0.40
codegen_flags: <defaults>
</compile_context>

<pallas_src>
import functools

import jax
import jax.numpy as jnp
from jax.experimental import pallas as pl
from jax.experimental.pallas import tpu as pltpu

BN_EPS = 1e-5


def _round_up(v, m):
    return (v + m - 1) // m * m


def _itemsize(dt):
    return jnp.dtype(dt).itemsize


def _vmem_capacity_bytes():
    """Physical VMEM of the local TPU; conservative 64 MiB (v7x) fallback."""
    try:
        cap = getattr(pltpu.get_tpu_info(), "vmem_capacity_bytes", None)
        if cap:
            return int(cap)
    except Exception:
        pass
    return 64 * 1024 * 1024


def _weight_spec(tk, tn, deep_buffer):
    idx = lambda n, k: (k, n)
    if deep_buffer:
        try:  # pipeline_mode / pl.Buffered may be missing on older jax
            return pl.BlockSpec((tk, tn), idx, pipeline_mode=pl.Buffered(3))
        except Exception:
            pass
    return pl.BlockSpec((tk, tn), idx)


def _linear_bn_relu_kernel(x_ref, wt_ref, gb_ref, o_ref, *scratch,
                           batch, eps, k_steps):
    """Produces one (m_pad, tn) output tile. Grid = (n_tiles, k_tiles); k is
    the matmul reduction axis. BN is folded into one per-feature scale/shift."""
    acc_ref = scratch[0] if scratch else o_ref  # f32 accumulator (may be o_ref)

    def epilogue(y):
        # y: (m_pad, tn) f32. Padded batch rows of x are zero => those rows of
        # y are zero, so plain column sums already sum over the real batch.
        # Single-pass variance E[y^2] - mean^2 in f32, clamped at 0 (BN inputs
        # are well-conditioned; cancellation only matters if |mean| >> std).
        inv_b = jnp.float32(1.0 / batch)
        mean = jnp.sum(y, axis=0, keepdims=True) * inv_b
        ex2 = jnp.sum(y * y, axis=0, keepdims=True) * inv_b
        var = jnp.maximum(ex2 - mean * mean, 0.0)
        gb = gb_ref[...]                               # row0=gamma, row1=beta
        scale = gb[0:1, :] * jax.lax.rsqrt(var + eps)  # (1, tn)
        shift = gb[1:2, :] - mean * scale              # (1, tn)
        o_ref[...] = jnp.maximum(y * scale + shift, 0.0).astype(o_ref.dtype)

    if k_steps == 1:
        # Full-K residency: single MXU pass, no accumulator traffic at all.
        epilogue(jnp.dot(x_ref[...], wt_ref[...],
                         preferred_element_type=jnp.float32))
    else:
        k = pl.program_id(1)

        @pl.when(k == 0)
        def _():
            acc_ref[...] = jnp.zeros_like(acc_ref)

        acc_ref[...] += jnp.dot(x_ref[...], wt_ref[...],
                                preferred_element_type=jnp.float32)

        @pl.when(k == k_steps - 1)
        def _():
            epilogue(acc_ref[...].astype(jnp.float32))


def prepare_params(weight, gamma, beta, *, k_pad, n_pad, feed_dtype):
    """One-time parameter prep (hoist out of the hot path for repeated calls):
    pre-transposed zero-padded weight (Cin_pad, Cout_pad) in the MXU feed
    dtype and packed (gamma, beta) as an (8, Cout_pad) f32 slab (one DMA)."""
    cout, cin = weight.shape
    wt = jnp.zeros((k_pad, n_pad), feed_dtype)
    wt = wt.at[:cin, :cout].set(weight.T.astype(feed_dtype))
    gb = jnp.zeros((8, n_pad), jnp.float32)
    gb = gb.at[0, :cout].set(gamma.astype(jnp.float32))
    gb = gb.at[1, :cout].set(beta.astype(jnp.float32))
    return wt, gb


def linear_block(x, weight, bias, gamma, beta, *, matmul_dtype=None):
    """Forward of Linear_block.

    x: (B, Cin); weight: (Cout, Cin) [PyTorch layout]; bias/gamma/beta: (Cout,).
    matmul_dtype: optional dtype (e.g. jnp.bfloat16) for the MXU feed of x/W;
    accumulation and the BN epilogue stay in f32. Default keeps native dtype.
    The Linear bias is exactly cancelled by the training-mode BatchNorm mean
    subtraction, so it is accepted but unused.
    """
    del bias  # cancelled by BN mean subtraction (training-mode forward only)

    B, Cin = x.shape
    Cout = weight.shape[0]
    out_dtype = x.dtype
    feed_dtype = jnp.dtype(matmul_dtype) if matmul_dtype is not None else jnp.dtype(x.dtype)

    # ---- padded sizes (sublane multiple depends on the MXU feed dtype) ------
    sublane = {4: 8, 2: 16, 1: 32}.get(_itemsize(feed_dtype), 8)
    m_pad = _round_up(B, sublane)
    k_pad0 = _round_up(Cin, 128)
    n_pad0 = _round_up(Cout, 128)

    cap = _vmem_capacity_bytes()
    budget = int(cap * 0.45)           # headroom for double-buffering/compiler

    # ---- tn (parallel axis): big lane-dense tiles, but >=2 tiles when Cout
    # allows so both v7x TensorCores get work; pad n up to a tile multiple. ---
    tn = 128
    for c in (512, 256, 128):
        if c <= n_pad0 and _round_up(n_pad0, c) - n_pad0 <= 128:
            tn = c
            break
    n_pad = _round_up(n_pad0, tn)
    while tn > 128 and n_pad // tn < 2:
        tn //= 2
        n_pad = _round_up(n_pad0, tn)

    # ---- tk (reduction axis): prefer full-K residency (x DMA'd once, no
    # accumulator); otherwise the largest 128-multiple fitting the budget. ----
    def working_set(tk_, use_scratch, w_bufs=2):
        return (2 * m_pad * tk_ * _itemsize(feed_dtype)       # x (2 buffers)
                + w_bufs * tk_ * tn * _itemsize(feed_dtype)   # W^T stream
                + 2 * 8 * tn * 4                              # gamma/beta slab
                + 2 * m_pad * tn * _itemsize(out_dtype)       # resident output
                + (m_pad * tn * 4 if use_scratch else 0))     # f32 accumulator

    scratch_if_multi_k = jnp.dtype(out_dtype) != jnp.float32
    if working_set(k_pad0, use_scratch=False) <= budget:
        tk, k_pad = k_pad0, k_pad0
    else:
        tk = 128
        for c in (512, 256, 128):
            if (c <= k_pad0 and _round_up(k_pad0, c) - k_pad0 <= 128
                    and working_set(c, scratch_if_multi_k) <= budget):
                tk = c
                break
        k_pad = _round_up(k_pad0, tk)
        # For huge B on 64 MiB-VMEM parts an M-tiled two-pass (sum / sum-sq)
        # path would bound residency independent of batch size.

    n_steps = n_pad // tn
    k_steps = k_pad // tk
    use_scratch = (k_steps > 1) and scratch_if_multi_k
    deep_w_buffer = (m_pad <= 256) and (n_steps * k_steps >= 3)  # GEMV regime

    ws = working_set(tk, use_scratch, w_bufs=3 if deep_w_buffer else 2)
    vmem_limit = int(min(max(int(1.5 * ws), 32 * 1024 * 1024), int(cap * 0.9)))

    # ---- host-side padding / casts (zero padding is exact for the matmul) ---
    wt, gb = prepare_params(weight, gamma, beta,
                            k_pad=k_pad, n_pad=n_pad, feed_dtype=feed_dtype)
    if (m_pad, k_pad) == (B, Cin):
        xp = x.astype(feed_dtype)
    else:
        xp = jnp.zeros((m_pad, k_pad), feed_dtype).at[:B, :Cin].set(
            x.astype(feed_dtype))

    kernel = functools.partial(_linear_bn_relu_kernel,
                               batch=B, eps=BN_EPS, k_steps=k_steps)

    out_padded = pl.pallas_call(
        kernel,
        out_shape=jax.ShapeDtypeStruct((m_pad, n_pad), out_dtype),
        grid_spec=pltpu.PrefetchScalarGridSpec(
            num_scalar_prefetch=0,
            grid=(n_steps, k_steps),
            in_specs=[
                pl.BlockSpec((m_pad, tk), lambda n, k: (0, k)),   # x slab
                _weight_spec(tk, tn, deep_w_buffer),              # W^T
                pl.BlockSpec((8, tn), lambda n, k: (0, n)),       # gamma/beta
            ],
            out_specs=pl.BlockSpec((m_pad, tn), lambda n, k: (0, n)),
            scratch_shapes=([pltpu.VMEM((m_pad, tn), jnp.float32)]
                            if use_scratch else []),
        ),
        compiler_params=pltpu.CompilerParams(
            dimension_semantics=("parallel", "arbitrary"),
            vmem_limit_bytes=vmem_limit,
        ),
    )(xp, wt, gb)

    return out_padded[:B, :Cout]


def _reference(x, weight, bias, gamma, beta, matmul_dtype=None):
    if matmul_dtype is not None:
        y = jnp.dot(x.astype(matmul_dtype), weight.T.astype(matmul_dtype),
                    preferred_element_type=jnp.float32) + bias
    else:
        y = x @ weight.T + bias
    mean = jnp.mean(y, axis=0, keepdims=True)
    var = jnp.mean((y - mean) ** 2, axis=0, keepdims=True)
    y = (y - mean) / jnp.sqrt(var + BN_EPS) * gamma + beta
    return jnp.maximum(y, 0.0)


if __name__ == "__main__":
    key = jax.random.PRNGKey(0)
    B, Cin, Cout = 8, 32, 16

    kx, kw, kb = jax.random.split(key, 3)
    x = jax.random.normal(kx, (B, Cin), dtype=jnp.float32)

    # Deterministic parameter init (synthetic, matching PyTorch Linear shapes).
    bound = 1.0 / (Cin ** 0.5)
    weight = jax.random.uniform(kw, (Cout, Cin), jnp.float32, -bound, bound)
    bias = jax.random.uniform(kb, (Cout,), jnp.float32, -bound, bound)
    # BatchNorm1d default affine params.
    gamma = jnp.ones((Cout,), jnp.float32)
    beta = jnp.zeros((Cout,), jnp.float32)

    # Exact-semantics path (native f32 MXU feed).
    out = jax.block_until_ready(linear_block(x, weight, bias, gamma, beta))
    ref = _reference(x, weight, bias, gamma, beta)
    assert out.shape == (B, Cout)
    assert jnp.allclose(out, ref, atol=1e-4, rtol=1e-4), "mismatch (f32 path)"

    # bf16-MXU-feed fast path (perf recommendation); checked against a
    # reference that uses the same bf16 feed with f32 accumulation.
    out_bf = jax.block_until_ready(
        linear_block(x, weight, bias, gamma, beta, matmul_dtype=jnp.bfloat16))
    ref_bf = _reference(x, weight, bias, gamma, beta, matmul_dtype=jnp.bfloat16)
    assert out_bf.shape == (B, Cout)
    assert jnp.allclose(out_bf, ref_bf, atol=2e-3, rtol=2e-3), "mismatch (bf16 path)"

    print("KERNEL_OK")
</pallas_src>

<mosaic_0001>
module attributes {stable_mosaic.version = 11 : i64} {
  func.func @_linear_bn_relu_kernel(%arg0: i32, %arg1: i32, %arg2: memref<8x128xf32, #tpu.memory_space<vmem>>, %arg3: memref<128x128xf32, #tpu.memory_space<vmem>>, %arg4: memref<8x128xf32, #tpu.memory_space<vmem>>, %arg5: memref<8x128xf32, #tpu.memory_space<vmem>>) attributes {dimension_semantics = [#tpu.dimension_semantics<parallel>, #tpu.dimension_semantics<arbitrary>], iteration_bounds = array<i64: 1, 1>, scalar_prefetch = 0 : i64, scratch_operands = 0 : i64, tpu.core_type = #tpu.core_type<tc>, window_params = [{transform_indices = @transform_0, window_bounds = array<i64: 8, 128>}, {transform_indices = @transform_1, window_bounds = array<i64: 128, 128>}, {transform_indices = @transform_2, window_bounds = array<i64: 8, 128>}, {transform_indices = @transform_3, window_bounds = array<i64: 8, 128>}]} {
    %c0 = arith.constant 0 : index
    %c0_0 = arith.constant 0 : index
    %0 = vector.load %arg2[%c0, %c0_0] : memref<8x128xf32, #tpu.memory_space<vmem>>, vector<8x128xf32>
    %c0_1 = arith.constant 0 : index
    %c0_2 = arith.constant 0 : index
    %1 = vector.load %arg3[%c0_1, %c0_2] : memref<128x128xf32, #tpu.memory_space<vmem>>, vector<128x128xf32>
    %cst = arith.constant dense<0.000000e+00> : vector<8x128xf32>
    %2 = tpu.matmul %0, %1, %cst {dimension_numbers = #tpu.dot_dimension_numbers<[1], [0], [0], [1], [0, 0, 1, 1], [], []>} : vector<8x128xf32>, vector<128x128xf32>, vector<8x128xf32> -> vector<8x128xf32>
    %cst_3 = arith.constant dense<0.000000e+00> : vector<128xf32>
    %3 = vector.multi_reduction <add>, %2, %cst_3 [0] : vector<8x128xf32> to vector<128xf32>
    %4 = vector.shape_cast %3 : vector<128xf32> to vector<1x128xf32>
    %cst_4 = arith.constant 1.250000e-01 : f32
    %5 = vector.broadcast %cst_4 : f32 to vector<1x128xf32>
    %6 = arith.mulf %4, %5 : vector<1x128xf32>
    %7 = arith.mulf %2, %2 : vector<8x128xf32>
    %cst_5 = arith.constant dense<0.000000e+00> : vector<128xf32>
    %8 = vector.multi_reduction <add>, %7, %cst_5 [0] : vector<8x128xf32> to vector<128xf32>
    %9 = vector.shape_cast %8 : vector<128xf32> to vector<1x128xf32>
    %cst_6 = arith.constant 1.250000e-01 : f32
    %10 = vector.broadcast %cst_6 : f32 to vector<1x128xf32>
    %11 = arith.mulf %9, %10 : vector<1x128xf32>
    %12 = arith.mulf %6, %6 : vector<1x128xf32>
    %13 = arith.subf %11, %12 : vector<1x128xf32>
    %cst_7 = arith.constant 0.000000e+00 : f32
    %14 = vector.broadcast %cst_7 : f32 to vector<1x128xf32>
    %15 = arith.maximumf %13, %14 : vector<1x128xf32>
    %c0_8 = arith.constant 0 : index
    %c0_9 = arith.constant 0 : index
    %16 = vector.load %arg4[%c0_8, %c0_9] : memref<8x128xf32, #tpu.memory_space<vmem>>, vector<8x128xf32>
    %17 = vector.extract_strided_slice %16 {offsets = [0, 0], sizes = [1, 128], strides = [1, 1]} : vector<8x128xf32> to vector<1x128xf32>
    %cst_10 = arith.constant 9.99999974E-6 : f32
    %18 = vector.broadcast %cst_10 : f32 to vector<1x128xf32>
    %19 = arith.addf %15, %18 : vector<1x128xf32>
    %20 = math.rsqrt %19 : vector<1x128xf32>
    %21 = arith.mulf %17, %20 : vector<1x128xf32>
    %22 = vector.extract_strided_slice %16 {offsets = [1, 0], sizes = [1, 128], strides = [1, 1]} : vector<8x128xf32> to vector<1x128xf32>
    %23 = arith.mulf %6, %21 : vector<1x128xf32>
    %24 = arith.subf %22, %23 : vector<1x128xf32>
    %25 = vector.broadcast %21 : vector<1x128xf32> to vector<8x128xf32>
    %26 = arith.mulf %2, %25 : vector<8x128xf32>
    %27 = vector.broadcast %24 : vector<1x128xf32> to vector<8x128xf32>
    %28 = arith.addf %26, %27 : vector<8x128xf32>
    %cst_11 = arith.constant 0.000000e+00 : f32
    %29 = vector.broadcast %cst_11 : f32 to vector<8x128xf32>
    %30 = arith.maximumf %28, %29 : vector<8x128xf32>
    %c0_12 = arith.constant 0 : index
    %c0_13 = arith.constant 0 : index
    %31 = vector.load %arg5[%c0_12, %c0_13] : memref<8x128xf32, #tpu.memory_space<vmem>>, vector<8x128xf32>
    tpu.vector_store %arg5[%c0_12, %c0_13], %30 {strides = array<i32>} : memref<8x128xf32, #tpu.memory_space<vmem>>, vector<8x128xf32>,
    return
  }
  func.func @transform_0(%arg0: i32, %arg1: i32) -> (i32, i32) {
    %c0_i32 = arith.constant 0 : i32
    %c0_i32_0 = arith.constant 0 : i32
    return %c0_i32, %arg1 : i32, i32
  }
  func.func @transform_1(%arg0: i32, %arg1: i32) -> (i32, i32) {
    %c0_i32 = arith.constant 0 : i32
    return %arg1, %arg0 : i32, i32
  }
  func.func @transform_2(%arg0: i32, %arg1: i32) -> (i32, i32) {
    %c0_i32 = arith.constant 0 : i32
    %c0_i32_0 = arith.constant 0 : i32
    return %c0_i32, %arg0 : i32, i32
  }
  func.func @transform_3(%arg0: i32, %arg1: i32) -> (i32, i32) {
    %c0_i32 = arith.constant 0 : i32
    %c0_i32_0 = arith.constant 0 : i32
    return %c0_i32, %arg0 : i32, i32
  }
}

</mosaic_0001>

<bundles_post_ra>
// kernel: tpu_custom_call.1
= control target key start
LH: loop header
LB: loop body
LE: loop exit
PB: predicated region body
PF: predicated region fallthrough
CT: control target
= control target key end

     0   :  { %8 = vsyncpa [#allocation3], 0  ;;  %s303_s0 = inlined_call_operand.hbm [shape: f32[8,128], index: 0, kind: input, shape index: {}]   ;;  %s304_s1 = inlined_call_operand.hbm [shape: f32[128,128], index: 1, kind: input, shape index: {}]   ;;  %s305_s2 = inlined_call_operand.hbm [shape: f32[8,128], index: 2, kind: input, shape index: {}]   ;;  %s306_s3 = inlined_call_operand.hbm [shape: f32[8,128], index: 3, kind: output, shape index: {}]  }
   0x1   :  { %9 = vsyncpa [#allocation6], 0  ;;  %s26_s14 = sshll.u32 %s304_s1, 4  ;;  %s27_s14 = int_to_ptr.hbm [resolvable:$true] %s26_s14 }
   0x2   :  { %10 = vsyncpa [#allocation4], 0  ;;  %s265_s15 = smov [#allocation5]   ;;  %s16_s19 = sshll.u32 %s303_s0, 4  ;;  %s17_s19 = int_to_ptr.hbm [resolvable:$true] %s16_s19 }
   0x3   :  { %s28_s16 = sshll.u32 %s265_s15, 4  ;;  %s266_s20 = smov 128   ;;  %s29_s16 = int_to_ptr.vmem [resolvable:$true] %s28_s16 }
   0x4   :  { %s267_s21 = smov 8   ;;  %s268_s22 = smov [#allocation2]  }
   0x5   :  { %34 = dma.hbm_to_vmem [thread:$0]  %s27_s14, 2048, %s29_s16, [#allocation6], %s266_s20, %s266_s20, %s267_s21  }
   0x6   :  { %s18_s23 = sshll.u32 %s268_s22, 4  ;;  %s40_s26 = sshll.u32 %s305_s2, 4  ;;  %s19_s23 = int_to_ptr.vmem [resolvable:$true] %s18_s23  ;;  %s41_s26 = int_to_ptr.hbm [resolvable:$true] %s40_s26 }
   0x7   :  { %21 = dma.hbm_to_vmem [thread:$0]  %s17_s19, 128, %s19_s23, [#allocation3]  }
   0x8   :  { %s269_s1 = smov [#allocation7]  }
   0x9   :  { %s42_s27 = sshll.u32 %s269_s1, 4  ;;  %s43_s27 = int_to_ptr.vmem [resolvable:$true] %s42_s27 }
   0xa   :  { %45 = dma.hbm_to_vmem [thread:$0]  %s41_s26, 128, %s43_s27, [#allocation6]  }
   0xb   :  { %259 = dma.done.wait [#allocation3], 128  }
   0xc   :  { %260 = vsyncadd [#allocation3], 4294967168 }
   0xd   :  { %261 = dma.done.wait [#allocation6], 2176  }
   0xe   :  { %262 = vsyncadd [#allocation6], 4294965120  ;;  %v74_v0 = vld [vmem:[#allocation5 + $0x78] sm:$0xff]  ;;  %v73_v1 = vld [vmem:[#allocation5 + $0x70] sm:$0xff]  ;;  %s270_s0 = smov [#allocation8]   ;;  %s144_s30 = sshll.u32 %s306_s3, 4  ;;  %s145_s30 = int_to_ptr.hbm [resolvable:$true] %s144_s30 }
   0xf   :  { %75 = vmatpush.msra.mxu0 %v74_v0  ;;  %v72_v2 = vld [vmem:[#allocation5 + $0x68] sm:$0xff]  ;;  %v71_v3 = vld [vmem:[#allocation5 + $0x60] sm:$0xff]  ;;  %v70_v4 = vld [vmem:[#allocation5 + $0x58] sm:$0xff]  ;;  %s142_s2 = sshll.u32 %s270_s0, 4  ;;  %s143_s2 = int_to_ptr.vmem [resolvable:$true] %s142_s2 }
  0x10   :  { %v69_v5 = vld [vmem:[#allocation5 + $0x50] sm:$0xff]  ;;  %v68_v6 = vld [vmem:[#allocation5 + $0x48] sm:$0xff]  ;;  %v67_v7 = vld [vmem:[#allocation5 + $0x40] sm:$0xff] }
  0x11   :  { %76 = vmatpush.msra.mxu0 %v73_v1  ;;  %v66_v8 = vld [vmem:[#allocation5 + $0x38] sm:$0xff]  ;;  %v65_v9 = vld [vmem:[#allocation5 + $0x30] sm:$0xff]  ;;  %v64_v10 = vld [vmem:[#allocation5 + $0x28] sm:$0xff] }
  0x12   :  { %v63_v11 = vld [vmem:[#allocation5 + $0x20] sm:$0xff]  ;;  %v62_v12 = vld [vmem:[#allocation5 + $0x18] sm:$0xff]  ;;  %v61_v13 = vld [vmem:[#allocation5 + $0x10] sm:$0xff] }
  0x13   :  { %77 = vmatpush.msra.mxu0 %v72_v2  ;;  %v60_v14 = vld [vmem:[#allocation5 + $0x8] sm:$0xff]  ;;  %v59_v15 = vld [vmem:[#allocation5] sm:$0xff]  ;;  %v58_v16 = vld [vmem:[#allocation2] sm:$0xff] }
  0x14   :  { %v113_v42 = vld [vmem:[#allocation7] sm:$0xff] }
  0x15   :  { %78 = vmatpush.msra.mxu0 %v71_v3 }
  0x17   :  { %79 = vmatpush.msra.mxu0 %v70_v4 }
  0x19   :  { %80 = vmatpush.msra.mxu0 %v69_v5 }
  0x1b   :  { %81 = vmatpush.msra.mxu0 %v68_v6 }
  0x1d   :  { %82 = vmatpush.msra.mxu0 %v67_v7 }
  0x1f   :  { %83 = vmatpush.msra.mxu0 %v66_v8 }
  0x21   :  { %84 = vmatpush.msra.mxu0 %v65_v9 }
  0x23   :  { %85 = vmatpush.msra.mxu0 %v64_v10 }
  0x25   :  { %86 = vmatpush.msra.mxu0 %v63_v11 }
  0x27   :  { %87 = vmatpush.msra.mxu0 %v62_v12 }
  0x29   :  { %88 = vmatpush.msra.mxu0 %v61_v13 }
  0x2b   :  { %89 = vmatpush.msra.mxu0 %v60_v14 }
  0x2d   :  { %90 = vmatpush.msra.mxu0 %v59_v15 }
  0x2e   :  { %91 = vmatmul.f32.vlgmr.msra.gmra.mxu0 %v58_v16 }
  0xab   :  { %v92_v17 = vpop.f32.mrf.mxu0 }
  0xac   :  { %v95_v18 = vrot.slane %v92_v17, 4  ;;  %v102_v19 = vmul.f32 %v92_v17, %v92_v17 }
  0xae   :  { %v96_v20 = vadd.f32 %v95_v18, %v92_v17  ;;  %v103_v21 = vrot.slane %v102_v19, 4 }
  0xb0   :  { %v97_v22 = vrot.slane %v96_v20, 2  ;;  %v104_v23 = vadd.f32 %v103_v21, %v102_v19 }
  0xb2   :  { %v98_v24 = vadd.f32 %v97_v22, %v96_v20  ;;  %v105_v25 = vrot.slane %v104_v23, 2 }
  0xb4   :  { %v99_v26 = vrot.slane %v98_v24, 1  ;;  %v106_v27 = vadd.f32 %v105_v25, %v104_v23 }
  0xb6   :  { %v100_v28 = vadd.f32 %v99_v26, %v98_v24  ;;  %v107_v29 = vrot.slane %v106_v27, 1 }
  0xb8   :  { %v101_v30 = vmul.f32 0.125, %v100_v28  ;;  %v108_v31 = vadd.f32 %v107_v29, %v106_v27 }
  0xba   :  { %v109_v32 = vmul.f32 0.125, %v108_v31  ;;  %v110_v33 = vmul.f32 %v101_v30, %v101_v30 }
  0xbc   :  { %v111_v34 = vsub.f32 %v109_v32, %v110_v33 }
  0xbe   :  { %v112_v35 = vmax.f32 %v111_v34, 0.0 }
  0xc0   :  { %v114_v36 = vadd.f32 1e-05, %v112_v35 }
  0xc2   :  { %161 = vrsqrt.f32 %v114_v36  ;;  %vm121_vm1 = vweird.f32 %v114_v36 }
  0xc8   :  { %v162_v37 = vpop.eup %161 }
  0xc9   :  { %v116_v38 = vmul.f32 %v162_v37, %v114_v36  ;;  %vm122_vm0 = vweird.f32 %v162_v37 }
  0xca   :  { %vm123_vm2 = vmor %vm121_vm1, %vm122_vm0 }
  0xcb   :  { %v117_v39 = vmul.f32 %v162_v37, %v116_v38 }
  0xcd   :  { %v118_v40 = vmul.f32 0.5, %v117_v39 }
  0xcf   :  { %v119_v41 = vsub.f32 1.5, %v118_v40 }
  0xd1   :  { %v120_v43 = vmul.f32 %v162_v37, %v119_v41 }
  0xd3   :  { %v124_v44 = vsel %vm123_vm2, %v162_v37, %v120_v43 }
  0xd4   :  { %v125_v45 = vmul.f32 %v124_v44, %v113_v42 }
  0xd6   :  { %v126_v46 = vmul.f32 %v125_v45, %v101_v30  ;;  %v131_v48 = vperm.slane %v125_v45, 0 }
  0xd8   :  { %v128_v47 = vrot.slane %v126_v46, 7  ;;  %v132_v50 = vmul.f32 %v131_v48, %v92_v17 }
  0xda   :  { %v130_v49 = vsub.f32 %v113_v42, %v128_v47 }
  0xdc   :  { %v133_v51 = vperm.slane %v130_v49, 1 }
  0xde   :  { %v134_v52 = vadd.f32 %v133_v51, %v132_v50 }
  0xe0   :  { %v135_v53 = vmax.f32 %v134_v52, 0.0 }
  0xe2   :  { %136 = vst [vmem:[#allocation8] sm:$0xff] %v135_v53 }
  0xe3   :  { %147 = dma.vmem_to_hbm [thread:$0]  %s143_s2, 128, %s145_s30, [#allocation4]  }
  0xe4   :  { %263 = dma.done.wait [#allocation4], 128  }
  0xe5   :  { %264 = vsyncadd [#allocation4], 4294967168 }
  0xe6   :  { %152 = vsyncpa [#allocation3], 1 }
  0xe7   :  { %153 = vsyncpa [#allocation6], 1 }
  0xe8   :  { %154 = vsyncpa [#allocation4], 1 }

</bundles_post_ra>
